<compile_context>
chip_gen: v7x
topology: tpu7x:2x2x1
jax: 0.10.0
libtpu: 0.0.40
codegen_flags: <defaults>
</compile_context>

<pallas_src>
import functools

import jax
import jax.numpy as jnp
from jax.experimental import pallas as pl
from jax.experimental.pallas import tpu as pltpu

NEG_SLOPE = 0.01  # torch.nn.functional.leaky_relu default


def _round_up(x, m):
    return ((x + m - 1) // m) * m


def _leaky_relu(x):
    return jnp.where(x >= 0, x, NEG_SLOPE * x)


def mlp_kernel(x_ref, w1_ref, b1_ref, w2_ref, b2_ref, wo_ref, bo_ref, out_ref,
               *, compute_dtype):
    # One (TILE_B, in_features) slab of rows per grid step; whole forward pass fused.
    x = x_ref[...]
    if x.dtype != compute_dtype:
        x = x.astype(compute_dtype)

    # hidden layer 1: Linear (MXU, f32 accumulate) + bias + leaky_relu (f32 VPU)
    h = jnp.dot(x, w1_ref[...], preferred_element_type=jnp.float32) + b1_ref[...]
    h = _leaky_relu(h)
    if h.dtype != compute_dtype:
        h = h.astype(compute_dtype)

    # hidden layer 2
    h = jnp.dot(h, w2_ref[...], preferred_element_type=jnp.float32) + b2_ref[...]
    h = _leaky_relu(h)
    if h.dtype != compute_dtype:
        h = h.astype(compute_dtype)

    # output layer: Linear + numerically-stable softmax over the feature axis (dim=1)
    logits = jnp.dot(h, wo_ref[...], preferred_element_type=jnp.float32) + bo_ref[...]
    m = jnp.max(logits, axis=-1, keepdims=True)
    e = jnp.exp(logits - m)
    denom = jnp.sum(e, axis=-1, keepdims=True)
    # reciprocal-multiply instead of divide; use approx=True for the EUP fast path when
    # strict f32 parity is not required.
    inv = pl.reciprocal(denom, approx=False)
    out_ref[...] = (e * inv).astype(out_ref.dtype)


def simple_neural_network_forward(x, params, *, tile_b=512, compute_dtype=jnp.float32):
    """x: (B, in_features) float32. params: dict of transposed weights / (1, out) biases.

    tile_b: rows of x processed per grid step (sized generously; the activations are only
    16-32 lanes wide, so even thousands of rows are a few hundred KiB of VMEM).
    compute_dtype: jnp.float32 or jnp.bfloat16 (bf16 recommended on v6e/v7x; accumulation,
    bias adds, leaky_relu and softmax stay in f32 either way).
    """
    (w1, b1), (w2, b2), (wo, bo) = params["h1"], params["h2"], params["out"]
    B, in_f = x.shape
    h1 = w1.shape[1]
    h2 = w2.shape[1]
    out_f = wo.shape[1]

    # Cast MXU operands (weights + x) to the compute dtype; biases stay f32 so the
    # epilogue math is f32.
    if jnp.dtype(compute_dtype) != jnp.dtype(jnp.float32):
        w1c, w2c, woc = (w.astype(compute_dtype) for w in (w1, w2, wo))
        x = x.astype(compute_dtype)
    else:
        w1c, w2c, woc = w1, w2, wo

    # Tile size: multiple of 8 sublanes, no larger than the (rounded-up) batch.
    tile_b = _round_up(max(8, min(tile_b, _round_up(B, 8))), 8)
    b_pad = _round_up(B, tile_b)
    if b_pad != B:
        x = jnp.pad(x, ((0, b_pad - B), (0, 0)))
    grid = (b_pad // tile_b,)

    # Advisory cost estimate so XLA schedules/overlaps this call correctly.
    flops = 2 * b_pad * (in_f * h1 + h1 * h2 + h2 * out_f)
    bytes_accessed = int(
        x.size * x.dtype.itemsize
        + sum(a.size * a.dtype.itemsize for a in (w1c, b1, w2c, b2, woc, bo))
        + b_pad * out_f * 4
    )
    cost = pl.CostEstimate(
        flops=flops,
        transcendentals=b_pad * out_f,   # exp() in the softmax
        bytes_accessed=bytes_accessed,
    )

    kernel = functools.partial(mlp_kernel, compute_dtype=compute_dtype)

    out = pl.pallas_call(
        kernel,
        out_shape=jax.ShapeDtypeStruct((b_pad, out_f), jnp.float32),
        grid=grid,
        in_specs=[
            pl.BlockSpec((tile_b, in_f), lambda i: (i, 0)),   # x: tiled over batch
            pl.BlockSpec((in_f, h1), lambda i: (0, 0)),       # weights/biases: resident
            pl.BlockSpec((1, h1), lambda i: (0, 0)),
            pl.BlockSpec((h1, h2), lambda i: (0, 0)),
            pl.BlockSpec((1, h2), lambda i: (0, 0)),
            pl.BlockSpec((h2, out_f), lambda i: (0, 0)),
            pl.BlockSpec((1, out_f), lambda i: (0, 0)),
        ],
        out_specs=pl.BlockSpec((tile_b, out_f), lambda i: (i, 0)),
        compiler_params=pltpu.CompilerParams(
            dimension_semantics=("parallel",),        # megacore sharding on v7x
            vmem_limit_bytes=32 * 1024 * 1024,        # safe vs v7x 64 MiB physical VMEM
        ),
        cost_estimate=cost,
    )(x, w1c, b1, w2c, b2, woc, bo)

    return out[:B] if b_pad != B else out


def init_params(key, hidden_sizes, out_size):
    """Deterministic init mimicking nn.Linear's U(-1/sqrt(fan_in), 1/sqrt(fan_in)).
    Weights stored transposed: (in_features, out_features). Biases stored as (1, out)."""
    params = {}
    names = ["h1", "h2", "out"]
    dims = list(zip(hidden_sizes[:-1], hidden_sizes[1:])) + [(hidden_sizes[-1], out_size)]
    for name, (fan_in, fan_out) in zip(names, dims):
        key, kw, kb = jax.random.split(key, 3)
        bound = 1.0 / jnp.sqrt(jnp.float32(fan_in))
        w = jax.random.uniform(kw, (fan_in, fan_out), jnp.float32, -bound, bound)
        b = jax.random.uniform(kb, (1, fan_out), jnp.float32, -bound, bound)
        params[name] = (w, b)
    return params


def reference_forward(x, params):
    (w1, b1), (w2, b2), (wo, bo) = params["h1"], params["h2"], params["out"]
    h = _leaky_relu(x @ w1 + b1)
    h = _leaky_relu(h @ w2 + b2)
    return jax.nn.softmax(h @ wo + bo, axis=1)


if __name__ == "__main__":
    # hidden_sizes = [16, 32, 32], out_size = 8  (2 hidden Linear layers + output)
    hidden_sizes = [16, 32, 32]
    out_size = 8
    batch = 256  # small, but enough rows to exercise a 2-step batch grid at tile_b=128

    key = jax.random.PRNGKey(0)
    key, kx = jax.random.split(key)
    x = jax.random.normal(kx, (batch, hidden_sizes[0]), jnp.float32)
    params = init_params(key, hidden_sizes, out_size)

    ref = reference_forward(x, params)

    # f32 path: strict parity with the JAX reference.
    out = simple_neural_network_forward(x, params, tile_b=128)
    out = jax.block_until_ready(out)
    assert out.shape == (batch, out_size)
    assert jnp.allclose(out, ref, atol=1e-5, rtol=1e-5), "f32 mismatch vs JAX reference"
    assert jnp.allclose(jnp.sum(out, axis=1), jnp.ones(batch), atol=1e-5)

    # bf16 MXU fast path (v6e/v7x): f32 accumulation keeps softmax well-conditioned.
    out_bf16 = simple_neural_network_forward(
        x, params, tile_b=128, compute_dtype=jnp.bfloat16)
    out_bf16 = jax.block_until_ready(out_bf16)
    assert jnp.allclose(out_bf16, ref, atol=2e-2, rtol=2e-2), "bf16 mismatch vs reference"

    # Ragged batch (not a multiple of the tile): padded inside the wrapper, sliced after.
    out_ragged = simple_neural_network_forward(x[:100], params, tile_b=128)
    out_ragged = jax.block_until_ready(out_ragged)
    assert jnp.allclose(out_ragged, ref[:100], atol=1e-5, rtol=1e-5), "ragged-batch mismatch"

    print("KERNEL_OK")
</pallas_src>

<mosaic_0001>
module attributes {stable_mosaic.version = 11 : i64} {
  func.func @mlp_kernel(%arg0: i32, %arg1: memref<128x16xf32, #tpu.memory_space<vmem>>, %arg2: memref<16x32xf32, #tpu.memory_space<vmem>>, %arg3: memref<1x32xf32, #tpu.memory_space<vmem>>, %arg4: memref<32x32xf32, #tpu.memory_space<vmem>>, %arg5: memref<1x32xf32, #tpu.memory_space<vmem>>, %arg6: memref<32x8xf32, #tpu.memory_space<vmem>>, %arg7: memref<1x8xf32, #tpu.memory_space<vmem>>, %arg8: memref<128x8xf32, #tpu.memory_space<vmem>>) attributes {dimension_semantics = [#tpu.dimension_semantics<parallel>], iteration_bounds = array<i64: 2>, scalar_prefetch = 0 : i64, scratch_operands = 0 : i64, tpu.core_type = #tpu.core_type<tc>, window_params = [{transform_indices = @transform_0, window_bounds = array<i64: 128, 16>}, {pipeline_mode = #tpu.pipeline_mode<synchronous>, transform_indices = @transform_1, window_bounds = array<i64: 16, 32>}, {pipeline_mode = #tpu.pipeline_mode<synchronous>, transform_indices = @transform_2, window_bounds = array<i64: 1, 32>}, {pipeline_mode = #tpu.pipeline_mode<synchronous>, transform_indices = @transform_3, window_bounds = array<i64: 32, 32>}, {pipeline_mode = #tpu.pipeline_mode<synchronous>, transform_indices = @transform_4, window_bounds = array<i64: 1, 32>}, {pipeline_mode = #tpu.pipeline_mode<synchronous>, transform_indices = @transform_5, window_bounds = array<i64: 32, 8>}, {pipeline_mode = #tpu.pipeline_mode<synchronous>, transform_indices = @transform_6, window_bounds = array<i64: 1, 8>}, {transform_indices = @transform_7, window_bounds = array<i64: 128, 8>}]} {
    %c0 = arith.constant 0 : index
    %c0_0 = arith.constant 0 : index
    %0 = vector.load %arg1[%c0, %c0_0] : memref<128x16xf32, #tpu.memory_space<vmem>>, vector<128x16xf32>
    %c0_1 = arith.constant 0 : index
    %c0_2 = arith.constant 0 : index
    %1 = vector.load %arg2[%c0_1, %c0_2] : memref<16x32xf32, #tpu.memory_space<vmem>>, vector<16x32xf32>
    %cst = arith.constant dense<0.000000e+00> : vector<128x32xf32>
    %2 = tpu.matmul %0, %1, %cst {dimension_numbers = #tpu.dot_dimension_numbers<[1], [0], [0], [1], [0, 0, 1, 1], [], []>} : vector<128x16xf32>, vector<16x32xf32>, vector<128x32xf32> -> vector<128x32xf32>
    %c0_3 = arith.constant 0 : index
    %c0_4 = arith.constant 0 : index
    %3 = vector.load %arg3[%c0_3, %c0_4] : memref<1x32xf32, #tpu.memory_space<vmem>>, vector<1x32xf32>
    %4 = vector.broadcast %3 : vector<1x32xf32> to vector<128x32xf32>
    %5 = arith.addf %2, %4 : vector<128x32xf32>
    %cst_5 = arith.constant 0.000000e+00 : f32
    %6 = vector.broadcast %cst_5 : f32 to vector<128x32xf32>
    %7 = arith.cmpf oge, %5, %6 : vector<128x32xf32>
    %cst_6 = arith.constant 0.00999999977 : f32
    %8 = vector.broadcast %cst_6 : f32 to vector<128x32xf32>
    %9 = arith.mulf %8, %5 : vector<128x32xf32>
    %10 = arith.select %7, %5, %9 : vector<128x32xi1>, vector<128x32xf32>
    %c0_7 = arith.constant 0 : index
    %c0_8 = arith.constant 0 : index
    %11 = vector.load %arg4[%c0_7, %c0_8] : memref<32x32xf32, #tpu.memory_space<vmem>>, vector<32x32xf32>
    %cst_9 = arith.constant dense<0.000000e+00> : vector<128x32xf32>
    %12 = tpu.matmul %10, %11, %cst_9 {dimension_numbers = #tpu.dot_dimension_numbers<[1], [0], [0], [1], [0, 0, 1, 1], [], []>} : vector<128x32xf32>, vector<32x32xf32>, vector<128x32xf32> -> vector<128x32xf32>
    %c0_10 = arith.constant 0 : index
    %c0_11 = arith.constant 0 : index
    %13 = vector.load %arg5[%c0_10, %c0_11] : memref<1x32xf32, #tpu.memory_space<vmem>>, vector<1x32xf32>
    %14 = vector.broadcast %13 : vector<1x32xf32> to vector<128x32xf32>
    %15 = arith.addf %12, %14 : vector<128x32xf32>
    %cst_12 = arith.constant 0.000000e+00 : f32
    %16 = vector.broadcast %cst_12 : f32 to vector<128x32xf32>
    %17 = arith.cmpf oge, %15, %16 : vector<128x32xf32>
    %cst_13 = arith.constant 0.00999999977 : f32
    %18 = vector.broadcast %cst_13 : f32 to vector<128x32xf32>
    %19 = arith.mulf %18, %15 : vector<128x32xf32>
    %20 = arith.select %17, %15, %19 : vector<128x32xi1>, vector<128x32xf32>
    %c0_14 = arith.constant 0 : index
    %c0_15 = arith.constant 0 : index
    %21 = vector.load %arg6[%c0_14, %c0_15] : memref<32x8xf32, #tpu.memory_space<vmem>>, vector<32x8xf32>
    %cst_16 = arith.constant dense<0.000000e+00> : vector<128x8xf32>
    %22 = tpu.matmul %20, %21, %cst_16 {dimension_numbers = #tpu.dot_dimension_numbers<[1], [0], [0], [1], [0, 0, 1, 1], [], []>} : vector<128x32xf32>, vector<32x8xf32>, vector<128x8xf32> -> vector<128x8xf32>
    %c0_17 = arith.constant 0 : index
    %c0_18 = arith.constant 0 : index
    %23 = vector.load %arg7[%c0_17, %c0_18] : memref<1x8xf32, #tpu.memory_space<vmem>>, vector<1x8xf32>
    %24 = vector.broadcast %23 : vector<1x8xf32> to vector<128x8xf32>
    %25 = arith.addf %22, %24 : vector<128x8xf32>
    %cst_19 = arith.constant dense<0xFF800000> : vector<128xf32>
    %26 = vector.multi_reduction <maximumf>, %25, %cst_19 [1] : vector<128x8xf32> to vector<128xf32>
    %27 = vector.shape_cast %26 : vector<128xf32> to vector<128x1xf32>
    %28 = vector.broadcast %27 : vector<128x1xf32> to vector<128x8xf32>
    %29 = arith.subf %25, %28 : vector<128x8xf32>
    %30 = math.exp %29 : vector<128x8xf32>
    %cst_20 = arith.constant dense<0.000000e+00> : vector<128xf32>
    %31 = vector.multi_reduction <add>, %30, %cst_20 [1] : vector<128x8xf32> to vector<128xf32>
    %32 = vector.shape_cast %31 : vector<128xf32> to vector<128x1xf32>
    %33 = tpu.reciprocal %32 : vector<128x1xf32> -> vector<128x1xf32>
    %34 = vector.broadcast %33 : vector<128x1xf32> to vector<128x8xf32>
    %35 = arith.mulf %30, %34 : vector<128x8xf32>
    %c0_21 = arith.constant 0 : index
    %c0_22 = arith.constant 0 : index
    %36 = vector.load %arg8[%c0_21, %c0_22] : memref<128x8xf32, #tpu.memory_space<vmem>>, vector<128x8xf32>
    tpu.vector_store %arg8[%c0_21, %c0_22], %35 {strides = array<i32>} : memref<128x8xf32, #tpu.memory_space<vmem>>, vector<128x8xf32>,
    return
  }
  func.func @transform_0(%arg0: i32) -> (i32, i32) {
    %c0_i32 = arith.constant 0 : i32
    %c0_i32_0 = arith.constant 0 : i32
    return %arg0, %c0_i32 : i32, i32
  }
  func.func @transform_1(%arg0: i32) -> (i32, i32) {
    %c0_i32 = arith.constant 0 : i32
    %c0_i32_0 = arith.constant 0 : i32
    %c0_i32_1 = arith.constant 0 : i32
    return %c0_i32, %c0_i32_0 : i32, i32
  }
  func.func @transform_2(%arg0: i32) -> (i32, i32) {
    %c0_i32 = arith.constant 0 : i32
    %c0_i32_0 = arith.constant 0 : i32
    %c0_i32_1 = arith.constant 0 : i32
    return %c0_i32, %c0_i32_0 : i32, i32
  }
  func.func @transform_3(%arg0: i32) -> (i32, i32) {
    %c0_i32 = arith.constant 0 : i32
    %c0_i32_0 = arith.constant 0 : i32
    %c0_i32_1 = arith.constant 0 : i32
    return %c0_i32, %c0_i32_0 : i32, i32
  }
  func.func @transform_4(%arg0: i32) -> (i32, i32) {
    %c0_i32 = arith.constant 0 : i32
    %c0_i32_0 = arith.constant 0 : i32
    %c0_i32_1 = arith.constant 0 : i32
    return %c0_i32, %c0_i32_0 : i32, i32
  }
  func.func @transform_5(%arg0: i32) -> (i32, i32) {
    %c0_i32 = arith.constant 0 : i32
    %c0_i32_0 = arith.constant 0 : i32
    %c0_i32_1 = arith.constant 0 : i32
    return %c0_i32, %c0_i32_0 : i32, i32
  }
  func.func @transform_6(%arg0: i32) -> (i32, i32) {
    %c0_i32 = arith.constant 0 : i32
    %c0_i32_0 = arith.constant 0 : i32
    %c0_i32_1 = arith.constant 0 : i32
    return %c0_i32, %c0_i32_0 : i32, i32
  }
  func.func @transform_7(%arg0: i32) -> (i32, i32) {
    %c0_i32 = arith.constant 0 : i32
    %c0_i32_0 = arith.constant 0 : i32
    return %arg0, %c0_i32 : i32, i32
  }
}

</mosaic_0001>

<bundles_post_ra>
// kernel: tpu_custom_call.1
= control target key start
LH: loop header
LB: loop body
LE: loop exit
PB: predicated region body
PF: predicated region fallthrough
CT: control target
= control target key end

     0   :  { %s1609_s24 = smov 0   ;;  %s1968_s0 = inlined_call_operand.vmem [shape: f32[256,16], index: 0, kind: input, shape index: {}]   ;;  %s1969_s1 = inlined_call_operand.vmem [shape: f32[16,32], index: 1, kind: input, shape index: {}]   ;;  %s1970_s2 = inlined_call_operand.vmem [shape: f32[1,32], index: 2, kind: input, shape index: {}]   ;;  %s1971_s3 = inlined_call_operand.vmem [shape: f32[32,32], index: 3, kind: input, shape index: {}]   ;;  %s1972_s4 = inlined_call_operand.vmem [shape: f32[1,32], index: 4, kind: input, shape index: {}]   ;;  %s1973_s5 = inlined_call_operand.vmem [shape: f32[32,8], index: 5, kind: input, shape index: {}]   ;;  %s1974_s6 = inlined_call_operand.vmem [shape: f32[1,8], index: 6, kind: input, shape index: {}]   ;;  %s1975_s7 = inlined_call_operand.vmem [shape: f32[256,8], index: 7, kind: output, shape index: {}]  }
   0x1 LB: > { %s1255_s25 = sadd.s32 4294967295, %s1567_s24   ;;  %p1259_p0 = scmp.ge.s32.totalorder %s1567_s24, 1  ;;  %s1567_s24 = sphi %s1609_s24, %s17_s24  }
   0x2   : > { %p238_p1 = scmp.lt.s32.totalorder %s1567_s24, 3 }
   0x4   : > { %p239_p2 = pnand %p1259_p0, %p238_p1 }
   0x5   : > { %v298_v0 = vld [vmem:[%s1969_s1] sm:$0xff] (!%p239_p2)  ;;  %v299_v1 = vld [vmem:[%s1969_s1 + $0x8] sm:$0xff] (!%p239_p2)  ;;  %s1260_s30 = sshll.u32 (!%p239_p2), %s1255_s25, 4  ;;  %vm307_vm0 = vcmask (!%p239_p2), 130048   ;;  %v551_v6 = vld [vmem:[%s1971_s3 + $0x10] sm:$0xff] (!%p239_p2)  ;;  %vm560_vm3 = vcmask (!%p239_p2), 261120  }
   0x6   : > { %242 = sbr.rel (%p239_p2) target bundleno = 1018 (0x3fa), region = 48  ;;  %v549_v2 = vld [vmem:[%s1971_s3] sm:$0xff] (!%p239_p2)  ;;  %v1467_v3 = vpack.c.bf16 (!%p239_p2), %v299_v1, %v298_v0  ;;  %p271_p3 = scmp.lt.s32.totalorder (!%p239_p2), %s1260_s30, 31  ;;  %v550_v4 = vld [vmem:[%s1971_s3 + $0x8] sm:$0xff] (!%p239_p2)  ;;  %v552_v7 = vld [vmem:[%s1971_s3 + $0x18] sm:$0xff] (!%p239_p2) }
   0x7   : > { %v1471_v5 = vpack.c.bf16 (!%p239_p2), %v550_v4, %v549_v2  ;;  %v1475_v12 = vpack.c.bf16 (!%p239_p2), %v552_v7, %v551_v6  ;;  %v802_v25 = vld [vmem:[%s1973_s5] sm:$0xff] (!%p239_p2)  ;;  %v803_v26 = vld [vmem:[%s1973_s5 + $0x8] sm:$0xff] (!%p239_p2)  ;;  %v804_v27 = vld [vmem:[%s1973_s5 + $0x10] sm:$0xff] (!%p239_p2) }
   0x8   : > { %1468 = vmatprep.subr.bf16.mxu0 (!%p239_p2), %v1467_v3  ;;  %1487 = vmatprep.subr.bf16.mxu1 (!%p239_p2), %v1467_v3  ;;  %v1479_v28 = vpack.c.bf16 (!%p239_p2), %v803_v26, %v802_v25  ;;  %v805_v29 = vld [vmem:[%s1973_s5 + $0x18] sm:$0xff] (!%p239_p2)  ;;  %v1692_v31 = vld [vmem:[%s1970_s2] ss:$0 sm:$0xff] (!%p239_p2) }
   0x9   : > { %1470 = vmatpush3.bf16.msra.mxu0 (!%p239_p2), %v1467_v3  ;;  %1488 = vmatpush3.bf16.msra.mxu1 (!%p239_p2), %v1467_v3  ;;  %v1483_v30 = vpack.c.bf16 (!%p239_p2), %v805_v29, %v804_v27 }
   0xa   : > { %1472 = vmatprep.subr.bf16.mxu1 (!%p239_p2), %v1471_v5  ;;  %1480 = vmatprep.subr.bf16.mxu0 (!%p239_p2), %v1479_v28 }
   0xd   : > { %s1977_s30 = smov (!%p271_p3, %s1260_s30), 31 }
   0xe   : > { %s1261_s12 = sshll.u32 %s1977_s30, 3 }
   0xf   : > { %s1637_s15 = scalar_lea.vmem %s1968_s0, %s1261_s12  ;;  %s1915_s16 = scalar_lea.vmem %s1975_s7, %s1261_s12 }
  0x10   : > { %v282_v8 = vld [vmem:[%s1637_s15] sm:$0xff]  ;;  %v283_v9 = vld [vmem:[%s1637_s15 + $0x8] sm:$0xff]  ;;  %v284_v10 = vld [vmem:[%s1637_s15 + $0x10] sm:$0xff] }
  0x11   : > { %1379 = vmatprep.mubr.msk.f32.mxu0 %vm307_vm0, %v282_v8  ;;  %v290_v11 = vld [vmem:[%s1637_s15 + $0x40] sm:$0xff]  ;;  %v285_v13 = vld [vmem:[%s1637_s15 + $0x18] sm:$0xff]  ;;  %v291_v14 = vld [vmem:[%s1637_s15 + $0x48] sm:$0xff] }
  0x12   : > { %1380 = vmatmul.mubr.msk.f32.vlgmr.msra.gmra.mrb[0].mxu0 %vm307_vm0, %v283_v9  ;;  %1391 = vmatprep.mubr.msk.f32.mxu1 %vm307_vm0, %v290_v11  ;;  %v292_v15 = vld [vmem:[%s1637_s15 + $0x50] sm:$0xff]  ;;  %v286_v16 = vld [vmem:[%s1637_s15 + $0x20] sm:$0xff]  ;;  %v293_v17 = vld [vmem:[%s1637_s15 + $0x58] sm:$0xff] }
  0x13   : > { %1382 = vmatprep.mubr.msk.f32.mxu0 %vm307_vm0, %v284_v10  ;;  %1392 = vmatmul.mubr.msk.f32.vlgmr.msra.gmra.mrb[0].mxu1 %vm307_vm0, %v291_v14  ;;  %v294_v18 = vld [vmem:[%s1637_s15 + $0x60] sm:$0xff]  ;;  %v287_v19 = vld [vmem:[%s1637_s15 + $0x28] sm:$0xff]  ;;  %v288_v20 = vld [vmem:[%s1637_s15 + $0x30] sm:$0xff] }
  0x14   : > { %1394 = vmatprep.mubr.msk.f32.mxu1 %vm307_vm0, %v292_v15  ;;  %1474 = vmatpush3.bf16.msra.mxu1 %v1471_v5  ;;  %v295_v21 = vld [vmem:[%s1637_s15 + $0x68] sm:$0xff]  ;;  %v296_v22 = vld [vmem:[%s1637_s15 + $0x70] sm:$0xff]  ;;  %v289_v23 = vld [vmem:[%s1637_s15 + $0x38] sm:$0xff] }
  0x15   : > { %1476 = vmatprep.subr.bf16.mxu1 %v1475_v12  ;;  %v297_v24 = vld [vmem:[%s1637_s15 + $0x78] sm:$0xff]  ;;  %1482 = vmatpush3.bf16.msra.mxu0 %v1479_v28 }
  0x16   : > { %1383 = vmatmul.mubr.msk.f32.gmra.mrb[2].mxu0 %vm307_vm0, %v285_v13  ;;  %1484 = vmatprep.subr.bf16.mxu0 %v1483_v30 }
  0x17   : > { %1385 = vmatprep.mubr.msk.f32.mxu0 %vm307_vm0, %v286_v16  ;;  %1395 = vmatmul.mubr.msk.f32.gmra.mrb[2].mxu1 %vm307_vm0, %v293_v17 }
  0x18   : > { %1397 = vmatprep.mubr.msk.f32.mxu1 %vm307_vm0, %v294_v18  ;;  %1478 = vmatpush3.bf16.msra.mxu1 %v1475_v12 }
  0x19   : > { %1486 = vmatpush3.bf16.msra.mxu0 %v1483_v30 }
  0x1a   : > { %1386 = vmatmul.mubr.msk.f32.gmra.mrb[4].mxu0 %vm307_vm0, %v287_v19 }
  0x1b   : > { %1388 = vmatprep.mubr.msk.f32.mxu0 %vm307_vm0, %v288_v20  ;;  %1398 = vmatmul.mubr.msk.f32.gmra.mrb[4].mxu1 %vm307_vm0, %v295_v21 }
  0x1c   : > { %1400 = vmatprep.mubr.msk.f32.mxu1 %vm307_vm0, %v296_v22 }
  0x1e   : > { %1389 = vmatmul.mubr.msk.f32.gmra.mrb[6].mxu0 %vm307_vm0, %v289_v23 }
  0x1f   : > { %1401 = vmatmul.mubr.msk.f32.gmra.mrb[6].mxu1 %vm307_vm0, %v297_v24 }
  0xe5   : > { %v1381_v32 = vpop.f32.mrb[0].mxu0 }
  0xe6   : > { %v428_v33 = vadd.f32 %v1381_v32, %v1692_v31  ;;  %v422_v34 = vpop.f32.mrb[1].mxu0  ;;  %v1393_v36 = vpop.f32.mrb[0].mxu1 }
  0xe7   : > { %v423_v35 = vadd.f32 %v1692_v31, %v422_v34  ;;  %v462_v38 = vpop.f32.mrb[1].mxu1  ;;  %v468_v0 = vadd.f32 %v1393_v36, %v1692_v31 }
  0xe8   : > { %v518_v37 = vmul.f32 0.01, %v428_v33  ;;  %vm502_vm1 = vcmp.ge.f32.partialorder %v428_v33, 0.0  ;;  %v463_v55 = vadd.f32 %v1692_v31, %v462_v38 }
  0xe9   : > { %vm501_vm2 = vcmp.ge.f32.partialorder %v423_v35, 0.0  ;;  %v517_v39 = vmul.f32 0.01, %v423_v35  ;;  %v1384_v40 = vpop.f32.mrb[2].mxu0  ;;  %vm510_vm11 = vcmp.ge.f32.partialorder %v468_v0, 0.0 }
  0xea   : > { %v438_v41 = vadd.f32 %v1384_v40, %v1692_v31  ;;  %v432_v42 = vpop.f32.mrb[3].mxu0  ;;  %v1396_v45 = vpop.f32.mrb[2].mxu1  ;;  %v534_v46 = vsel %vm502_vm1, %v428_v33, %v518_v37  ;;  %v525_v4 = vmul.f32 0.01, %v463_v55  ;;  %vm509_vm9 = vcmp.ge.f32.partialorder %v463_v55, 0.0 }
  0xeb   : > { %v433_v43 = vadd.f32 %v1692_v31, %v432_v42  ;;  %v533_v44 = vsel %vm501_vm2, %v423_v35, %v517_v39  ;;  %v472_v48 = vpop.f32.mrb[3].mxu1  ;;  %v526_v10 = vmul.f32 0.01, %v468_v0  ;;  %v478_v11 = vadd.f32 %v1396_v45, %v1692_v31 }
  0xec   : > { %v520_v47 = vmul.f32 0.01, %v438_v41  ;;  %1411 = vmatprep.mubr.msk.f32.mxu1 %vm560_vm3, %v533_v44  ;;  %vm504_vm4 = vcmp.ge.f32.partialorder %v438_v41, 0.0  ;;  %v473_v5 = vadd.f32 %v1692_v31, %v472_v48  ;;  %v541_v15 = vsel %vm509_vm9, %v463_v55, %v525_v4 }
  0xed   : > { %vm503_vm5 = vcmp.ge.f32.partialorder %v433_v43, 0.0  ;;  %v519_v49 = vmul.f32 0.01, %v433_v43  ;;  %v1387_v50 = vpop.f32.mrb[4].mxu0  ;;  %1412 = vmatmul.mubr.msk.f32.vlgmr.msra.gmra.mrb[8].mxu1 %vm560_vm3, %v534_v46  ;;  %v528_v17 = vmul.f32 0.01, %v478_v11  ;;  %v542_v19 = vsel %vm510_vm11, %v468_v0, %v526_v10 }
  0xee   : > { %v448_v51 = vadd.f32 %v1387_v50, %v1692_v31  ;;  %v442_v52 = vpop.f32.mrb[5].mxu0  ;;  %v1399_v56 = vpop.f32.mrb[4].mxu1  ;;  %v536_v58 = vsel %vm504_vm4, %v438_v41, %v520_v47  ;;  %v527_v14 = vmul.f32 0.01, %v473_v5  ;;  %vm511_vm12 = vcmp.ge.f32.partialorder %v473_v5, 0.0 }
  0xef   : > { %v443_v53 = vadd.f32 %v1692_v31, %v442_v52  ;;  %v535_v54 = vsel %vm503_vm5, %v433_v43, %v519_v49  ;;  %v482_v59 = vpop.f32.mrb[5].mxu1  ;;  %v488_v18 = vadd.f32 %v1399_v56, %v1692_v31  ;;  %vm512_vm13 = vcmp.ge.f32.partialorder %v478_v11, 0.0 }
  0xf0   : > { %vm506_vm6 = vcmp.ge.f32.partialorder %v448_v51, 0.0  ;;  %v522_v57 = vmul.f32 0.01, %v448_v51  ;;  %1414 = vmatprep.mubr.msk.f32.mxu1 %vm560_vm3, %v535_v54  ;;  %v483_v16 = vadd.f32 %v1692_v31, %v482_v59  ;;  %v543_v21 = vsel %vm511_vm12, %v473_v5, %v527_v14 }
  0xf1   : > { %vm505_vm7 = vcmp.ge.f32.partialorder %v443_v53, 0.0  ;;  %v521_v60 = vmul.f32 0.01, %v443_v53  ;;  %v1390_v61 = vpop.f32.mrb[6].mxu0  ;;  %1415 = vmatmul.mubr.msk.f32.gmra.mrb[10].mxu1 %vm560_vm3, %v536_v58  ;;  %v530_v23 = vmul.f32 0.01, %v488_v18  ;;  %v544_v25 = vsel %vm512_vm13, %v478_v11, %v528_v17 }
  0xf2   : > { %v458_v62 = vadd.f32 %v1390_v61, %v1692_v31  ;;  %v452_v63 = vpop.f32.mrb[7].mxu0  ;;  %v538_v1 = vsel %vm506_vm6, %v448_v51, %v522_v57  ;;  %v1402_v6 = vpop.f32.mrb[6].mxu1  ;;  %v529_v20 = vmul.f32 0.01, %v483_v16  ;;  %vm513_vm14 = vcmp.ge.f32.partialorder %v483_v16, 0.0 }
  0xf3   : > { %v453_v2 = vadd.f32 %v1692_v31, %v452_v63  ;;  %v537_v3 = vsel %vm505_vm7, %v443_v53, %v521_v60  ;;  %v492_v8 = vpop.f32.mrb[7].mxu1  ;;  %v498_v24 = vadd.f32 %v1402_v6, %v1692_v31  ;;  %vm514_vm15 = vcmp.ge.f32.partialorder %v488_v18, 0.0 }
  0xf4   : > { %vm508_vm8 = vcmp.ge.f32.partialorder %v458_v62, 0.0  ;;  %v524_v7 = vmul.f32 0.01, %v458_v62  ;;  %1417 = vmatprep.mubr.msk.f32.mxu1 %vm560_vm3, %v537_v3  ;;  %v493_v22 = vadd.f32 %v1692_v31, %v492_v8  ;;  %v545_v27 = vsel %vm513_vm14, %v483_v16, %v529_v20  ;;  %v1729_v31 = vld [vmem:[%s1972_s4] ss:$0 sm:$0xff] }
  0xf5   : > { %vm507_vm10 = vcmp.ge.f32.partialorder %v453_v2, 0.0  ;;  %v523_v9 = vmul.f32 0.01, %v453_v2  ;;  %1418 = vmatmul.mubr.msk.f32.gmra.mrb[12].mxu1 %vm560_vm3, %v538_v1  ;;  %v532_v28 = vmul.f32 0.01, %v498_v24  ;;  %v546_v29 = vsel %vm514_vm15, %v488_v18, %v530_v23 }
  0xf6   : > { %v540_v12 = vsel %vm508_vm8, %v458_v62, %v524_v7  ;;  %v531_v26 = vmul.f32 0.01, %v493_v22  ;;  %vm515_vm0 = vcmp.ge.f32.partialorder %v493_v22, 0.0  ;;  %vm516_vm1 = vcmp.ge.f32.partialorder %v498_v24, 0.0 }
  0xf7   : > { %v539_v13 = vsel %vm507_vm10, %v453_v2, %v523_v9  ;;  %v548_v32 = vsel %vm516_vm1, %v498_v24, %v532_v28 }
  0xf8   : > { %1420 = vmatprep.mubr.msk.f32.mxu1 %vm560_vm3, %v539_v13  ;;  %v547_v30 = vsel %vm515_vm0, %v493_v22, %v531_v26 }
  0xf9   : > { %1421 = vmatmul.mubr.msk.f32.gmra.mrb[14].mxu1 %vm560_vm3, %v540_v12 }
  0xfa   : > { %1423 = vmatprep.mubr.msk.f32.mxu1 %vm560_vm3, %v541_v15 }
  0xfd   : > { %1424 = vmatmul.mubr.msk.f32.gmra.mrb[16].mxu1 %vm560_vm3, %v542_v19 }
  0xfe   : > { %1426 = vmatprep.mubr.msk.f32.mxu1 %vm560_vm3, %v543_v21 }
 0x101   : > { %1427 = vmatmul.mubr.msk.f32.gmra.mrb[18].mxu1 %vm560_vm3, %v544_v25 }
 0x102   : > { %1429 = vmatprep.mubr.msk.f32.mxu1 %vm560_vm3, %v545_v27 }
 0x105   : > { %1430 = vmatmul.mubr.msk.f32.gmra.mrb[20].mxu1 %vm560_vm3, %v546_v29 }
 0x106   : > { %1432 = vmatprep.mubr.msk.f32.mxu1 %vm560_vm3, %v547_v30 }
 0x109   : > { %1433 = vmatmul.mubr.msk.f32.gmra.mrb[22].mxu1 %vm560_vm3, %v548_v32 }
 0x1c0   : > { %v1413_v33 = vpop.f32.mrb[8].mxu1 }
 0x1c1   : > { %v681_v34 = vadd.f32 %v1413_v33, %v1729_v31  ;;  %v675_v35 = vpop.f32.mrb[9].mxu1 }
 0x1c2   : > { %v676_v36 = vadd.f32 %v1729_v31, %v675_v35 }
 0x1c3   : > { %v771_v37 = vmul.f32 0.01, %v681_v34  ;;  %vm755_vm2 = vcmp.ge.f32.partialorder %v681_v34, 0.0 }
 0x1c4   : > { %vm754_vm4 = vcmp.ge.f32.partialorder %v676_v36, 0.0  ;;  %v770_v38 = vmul.f32 0.01, %v676_v36  ;;  %v1416_v39 = vpop.f32.mrb[10].mxu1 }
 0x1c5   : > { %v691_v40 = vadd.f32 %v1416_v39, %v1729_v31  ;;  %v685_v41 = vpop.f32.mrb[11].mxu1  ;;  %v787_v44 = vsel %vm755_vm2, %v681_v34, %v771_v37 }
 0x1c6   : > { %v686_v42 = vadd.f32 %v1729_v31, %v685_v41  ;;  %v786_v43 = vsel %vm754_vm4, %v676_v36, %v770_v38  ;;  %vm1006_vm4 = vcmask 64512  }
 0x1c7   : > { %v773_v45 = vmul.f32 0.01, %v691_v40  ;;  %1443 = vmatprep.mubr.msk.f32.mxu0 %vm560_vm3, %v786_v43  ;;  %vm757_vm5 = vcmp.ge.f32.partialorder %v691_v40, 0.0 }
 0x1c8   : > { %vm756_vm6 = vcmp.ge.f32.partialorder %v686_v42, 0.0  ;;  %v772_v46 = vmul.f32 0.01, %v686_v42  ;;  %v1419_v47 = vpop.f32.mrb[12].mxu1  ;;  %1444 = vmatmul.mubr.msk.f32.vlgmr.msra.gmra.mrb[8].mxu0 %vm560_vm3, %v787_v44 }
 0x1c9   : > { %v701_v48 = vadd.f32 %v1419_v47, %v1729_v31  ;;  %v695_v49 = vpop.f32.mrb[13].mxu1  ;;  %v789_v53 = vsel %vm757_vm5, %v691_v40, %v773_v45 }
 0x1ca   : > { %v696_v50 = vadd.f32 %v1729_v31, %v695_v49  ;;  %v788_v51 = vsel %vm756_vm6, %v686_v42, %v772_v46 }
 0x1cb   : > { %v775_v52 = vmul.f32 0.01, %v701_v48  ;;  %1446 = vmatprep.mubr.msk.f32.mxu0 %vm560_vm3, %v788_v51  ;;  %vm759_vm7 = vcmp.ge.f32.partialorder %v701_v48, 0.0 }
 0x1cc   : > { %vm758_vm8 = vcmp.ge.f32.partialorder %v696_v50, 0.0  ;;  %v774_v54 = vmul.f32 0.01, %v696_v50  ;;  %v1422_v55 = vpop.f32.mrb[14].mxu1  ;;  %1447 = vmatmul.mubr.msk.f32.gmra.mrb[10].mxu0 %vm560_vm3, %v789_v53 }
 0x1cd   : > { %v711_v56 = vadd.f32 %v1422_v55, %v1729_v31  ;;  %v705_v57 = vpop.f32.mrb[15].mxu1  ;;  %v791_v61 = vsel %vm759_vm7, %v701_v48, %v775_v52 }
 0x1ce   : > { %v706_v58 = vadd.f32 %v1729_v31, %v705_v57  ;;  %v790_v59 = vsel %vm758_vm8, %v696_v50, %v774_v54 }
 0x1cf   : > { %v777_v60 = vmul.f32 0.01, %v711_v56  ;;  %1449 = vmatprep.mubr.msk.f32.mxu0 %vm560_vm3, %v790_v59  ;;  %vm761_vm9 = vcmp.ge.f32.partialorder %v711_v56, 0.0 }
 0x1d0   : > { %vm760_vm10 = vcmp.ge.f32.partialorder %v706_v58, 0.0  ;;  %v776_v62 = vmul.f32 0.01, %v706_v58  ;;  %v1425_v63 = vpop.f32.mrb[16].mxu1  ;;  %1450 = vmatmul.mubr.msk.f32.gmra.mrb[12].mxu0 %vm560_vm3, %v791_v61 }
 0x1d1   : > { %v721_v0 = vadd.f32 %v1425_v63, %v1729_v31  ;;  %v715_v1 = vpop.f32.mrb[17].mxu1  ;;  %v793_v5 = vsel %vm761_vm9, %v711_v56, %v777_v60 }
 0x1d2   : > { %v716_v2 = vadd.f32 %v1729_v31, %v715_v1  ;;  %v792_v3 = vsel %vm760_vm10, %v706_v58, %v776_v62 }
 0x1d3   : > { %v779_v4 = vmul.f32 0.01, %v721_v0  ;;  %1452 = vmatprep.mubr.msk.f32.mxu0 %vm560_vm3, %v792_v3  ;;  %vm763_vm11 = vcmp.ge.f32.partialorder %v721_v0, 0.0 }
 0x1d4   : > { %vm762_vm12 = vcmp.ge.f32.partialorder %v716_v2, 0.0  ;;  %v778_v6 = vmul.f32 0.01, %v716_v2  ;;  %v1428_v7 = vpop.f32.mrb[18].mxu1  ;;  %1453 = vmatmul.mubr.msk.f32.gmra.mrb[14].mxu0 %vm560_vm3, %v793_v5 }
 0x1d5   : > { %v731_v8 = vadd.f32 %v1428_v7, %v1729_v31  ;;  %v725_v9 = vpop.f32.mrb[19].mxu1  ;;  %v795_v13 = vsel %vm763_vm11, %v721_v0, %v779_v4 }
 0x1d6   : > { %v726_v10 = vadd.f32 %v1729_v31, %v725_v9  ;;  %v794_v11 = vsel %vm762_vm12, %v716_v2, %v778_v6 }
 0x1d7   : > { %v781_v12 = vmul.f32 0.01, %v731_v8  ;;  %1455 = vmatprep.mubr.msk.f32.mxu0 %vm560_vm3, %v794_v11  ;;  %vm765_vm13 = vcmp.ge.f32.partialorder %v731_v8, 0.0 }
 0x1d8   : > { %vm764_vm14 = vcmp.ge.f32.partialorder %v726_v10, 0.0  ;;  %v780_v14 = vmul.f32 0.01, %v726_v10  ;;  %v1431_v15 = vpop.f32.mrb[20].mxu1  ;;  %1456 = vmatmul.mubr.msk.f32.gmra.mrb[16].mxu0 %vm560_vm3, %v795_v13 }
 0x1d9   : > { %v741_v16 = vadd.f32 %v1431_v15, %v1729_v31  ;;  %v735_v17 = vpop.f32.mrb[21].mxu1  ;;  %v797_v21 = vsel %vm765_vm13, %v731_v8, %v781_v12 }
 0x1da   : > { %v736_v18 = vadd.f32 %v1729_v31, %v735_v17  ;;  %v796_v19 = vsel %vm764_vm14, %v726_v10, %v780_v14 }
 0x1db   : > { %v783_v20 = vmul.f32 0.01, %v741_v16  ;;  %1458 = vmatprep.mubr.msk.f32.mxu0 %vm560_vm3, %v796_v19  ;;  %vm767_vm15 = vcmp.ge.f32.partialorder %v741_v16, 0.0 }
 0x1dc   : > { %vm766_vm0 = vcmp.ge.f32.partialorder %v736_v18, 0.0  ;;  %v782_v22 = vmul.f32 0.01, %v736_v18  ;;  %v1434_v23 = vpop.f32.mrb[22].mxu1  ;;  %1459 = vmatmul.mubr.msk.f32.gmra.mrb[18].mxu0 %vm560_vm3, %v797_v21 }
 0x1dd   : > { %v751_v24 = vadd.f32 %v1434_v23, %v1729_v31  ;;  %v745_v25 = vpop.f32.mrb[23].mxu1  ;;  %v799_v29 = vsel %vm767_vm15, %v741_v16, %v783_v20 }
 0x1de   : > { %v746_v26 = vadd.f32 %v1729_v31, %v745_v25  ;;  %v798_v27 = vsel %vm766_vm0, %v736_v18, %v782_v22  ;;  %v1298_v31 = vld [vmem:[%s1974_s6] ss:$0 sm:$0xff] }
 0x1df   : > { %v785_v28 = vmul.f32 0.01, %v751_v24  ;;  %1461 = vmatprep.mubr.msk.f32.mxu0 %vm560_vm3, %v798_v27  ;;  %vm769_vm1 = vcmp.ge.f32.partialorder %v751_v24, 0.0 }
 0x1e0   : > { %vm768_vm2 = vcmp.ge.f32.partialorder %v746_v26, 0.0  ;;  %v784_v30 = vmul.f32 0.01, %v746_v26  ;;  %1462 = vmatmul.mubr.msk.f32.gmra.mrb[20].mxu0 %vm560_vm3, %v799_v29 }
 0x1e1   : > { %v801_v33 = vsel %vm769_vm1, %v751_v24, %v785_v28 }
 0x1e2   : > { %v800_v32 = vsel %vm768_vm2, %v746_v26, %v784_v30 }
 0x1e3   : > { %1464 = vmatprep.mubr.msk.f32.mxu0 %vm560_vm3, %v800_v32 }
 0x1e4   : > { %1465 = vmatmul.mubr.msk.f32.gmra.mrb[22].mxu0 %vm560_vm3, %v801_v33 }
 0x29b   : > { %v1445_v34 = vpop.f32.mrb[8].mxu0 }
 0x29c   : > { %v1766_v35 = vadd.f32 %v1445_v34, %v1298_v31  ;;  %v927_v36 = vpop.f32.mrb[9].mxu0 }
 0x29d   : > { %v1768_v37 = vadd.f32 %v1298_v31, %v927_v36 }
 0x29e   : > { %v1010_v38 = vsel %vm1006_vm4, %v1766_v35, -inf }
 0x29f   : > { %1011 = vmax.xlane.f32.xlu0 %v1010_v38  ;;  %v1448_v39 = vpop.f32.mrb[10].mxu0  ;;  %v1007_v44 = vsel %vm1006_vm4, %v1768_v37, -inf }
 0x2a0   : > { %v1772_v40 = vadd.f32 %v1448_v39, %v1298_v31  ;;  %v937_v41 = vpop.f32.mrb[11].mxu0 }
 0x2a1   : > { %v1774_v42 = vadd.f32 %v1298_v31, %v937_v41 }
 0x2a2   : > { %v1016_v43 = vsel %vm1006_vm4, %v1772_v40, -inf }
 0x2a3   : > { %1017 = vmax.xlane.f32.xlu1 %v1016_v43  ;;  %v1451_v45 = vpop.f32.mrb[12].mxu0  ;;  %1008 = vmax.xlane.f32.xlu0 %v1007_v44  ;;  %v1013_v49 = vsel %vm1006_vm4, %v1774_v42, -inf }
 0x2a4   : > { %v947_v46 = vpop.f32.mrb[13].mxu0  ;;  %v1782_v48 = vadd.f32 %v1451_v45, %v1298_v31 }
 0x2a5   : > { %v1780_v47 = vadd.f32 %v1298_v31, %v947_v46 }
 0x2a6   : > { %v1022_v55 = vsel %vm1006_vm4, %v1782_v48, -inf }
 0x2a7   : > { %v1454_v50 = vpop.f32.mrb[14].mxu0  ;;  %1014 = vmax.xlane.f32.xlu1 %v1013_v49  ;;  %v1019_v51 = vsel %vm1006_vm4, %v1780_v47, -inf }
 0x2a8   : > { %v957_v52 = vpop.f32.mrb[15].mxu0  ;;  %1020 = vmax.xlane.f32.xlu0 %v1019_v51  ;;  %v1790_v54 = vadd.f32 %v1454_v50, %v1298_v31 }
 0x2a9   : > { %v1788_v53 = vadd.f32 %v1298_v31, %v957_v52 }
 0x2aa   : > { %v1028_v61 = vsel %vm1006_vm4, %v1790_v54, -inf }
 0x2ab   : > { %v1457_v56 = vpop.f32.mrb[16].mxu0  ;;  %1023 = vmax.xlane.f32.xlu1 %v1022_v55  ;;  %v1025_v57 = vsel %vm1006_vm4, %v1788_v53, -inf }
 0x2ac   : > { %v967_v58 = vpop.f32.mrb[17].mxu0  ;;  %1026 = vmax.xlane.f32.xlu0 %v1025_v57  ;;  %v1798_v60 = vadd.f32 %v1457_v56, %v1298_v31 }
 0x2ad   : > { %v1796_v59 = vadd.f32 %v1298_v31, %v967_v58 }
 0x2ae   : > { %v1034_v3 = vsel %vm1006_vm4, %v1798_v60, -inf }
 0x2af   : > { %v1460_v62 = vpop.f32.mrb[18].mxu0  ;;  %1029 = vmax.xlane.f32.xlu1 %v1028_v61  ;;  %v1031_v63 = vsel %vm1006_vm4, %v1796_v59, -inf }
 0x2b0   : > { %v977_v0 = vpop.f32.mrb[19].mxu0  ;;  %1032 = vmax.xlane.f32.xlu0 %v1031_v63  ;;  %v1806_v2 = vadd.f32 %v1460_v62, %v1298_v31 }
 0x2b1   : > { %v1804_v1 = vadd.f32 %v1298_v31, %v977_v0 }
 0x2b2   : > { %v1040_v9 = vsel %vm1006_vm4, %v1806_v2, -inf }
 0x2b3   : > { %v1463_v4 = vpop.f32.mrb[20].mxu0  ;;  %1035 = vmax.xlane.f32.xlu1 %v1034_v3  ;;  %v1037_v5 = vsel %vm1006_vm4, %v1804_v1, -inf }
 0x2b4   : > { %v987_v6 = vpop.f32.mrb[21].mxu0  ;;  %1038 = vmax.xlane.f32.xlu0 %v1037_v5  ;;  %v1814_v8 = vadd.f32 %v1463_v4, %v1298_v31 }
 0x2b5   : > { %v1812_v7 = vadd.f32 %v1298_v31, %v987_v6 }
 0x2b6   : > { %v1046_v15 = vsel %vm1006_vm4, %v1814_v8, -inf }
 0x2b7   : > { %v1466_v10 = vpop.f32.mrb[22].mxu0  ;;  %1041 = vmax.xlane.f32.xlu1 %v1040_v9  ;;  %v1043_v11 = vsel %vm1006_vm4, %v1812_v7, -inf }
 0x2b8   : > { %v997_v12 = vpop.f32.mrb[23].mxu0  ;;  %1044 = vmax.xlane.f32.xlu0 %v1043_v11  ;;  %v1822_v14 = vadd.f32 %v1466_v10, %v1298_v31 }
 0x2b9   : > { %v1820_v13 = vadd.f32 %v1298_v31, %v997_v12 }
 0x2ba   : > { %v1052_v17 = vsel %vm1006_vm4, %v1822_v14, -inf }
 0x2bb   : > { %1047 = vmax.xlane.f32.xlu1 %v1046_v15  ;;  %v1049_v16 = vsel %vm1006_vm4, %v1820_v13, -inf }
 0x2bc   : > { %1050 = vmax.xlane.f32.xlu0 %v1049_v16 }
 0x2bf   : > { %1053 = vmax.xlane.f32.xlu1 %v1052_v17 }
 0x32c   : > { %v1012_v18 = vpop.xlane.xlu0 %1011 }
 0x32d   : > { %v1056_v19 = vsub.f32 %v1766_v35, %v1012_v18 }
 0x32f   : > { %v1073_v20 = vmul.f32 1.442695, %v1056_v19 }
 0x330   : > { %v1018_v21 = vpop.xlane.xlu1 %1017  ;;  %v1009_v22 = vpop.xlane.xlu0 %1008 }
 0x331   : > { %1497 = vpow2.f32 %v1073_v20  ;;  %v1058_v23 = vsub.f32 %v1772_v40, %v1018_v21  ;;  %v1055_v24 = vsub.f32 %v1768_v37, %v1009_v22 }
 0x333   : > { %v1077_v25 = vmul.f32 1.442695, %v1058_v23  ;;  %v1071_v26 = vmul.f32 1.442695, %v1055_v24 }
 0x334   : > { %v1015_v27 = vpop.xlane.xlu1 %1014 }
 0x335   : > { %1499 = vpow2.f32 %v1077_v25  ;;  %v1057_v28 = vsub.f32 %v1774_v42, %v1015_v27  ;;  %v1021_v29 = vpop.xlane.xlu0 %1020 }
 0x336   : > { %1501 = vpow2.f32 %v1071_v26  ;;  %v1059_v30 = vsub.f32 %v1780_v47, %v1021_v29 }
 0x337   : > { %v1075_v32 = vmul.f32 1.442695, %v1057_v28 }
 0x338   : > { %v1079_v33 = vmul.f32 1.442695, %v1059_v30  ;;  %v1024_v31 = vpop.xlane.xlu1 %1023 }
 0x339   : > { %1503 = vpow2.f32 %v1075_v32  ;;  %v1060_v34 = vsub.f32 %v1782_v48, %v1024_v31  ;;  %v1027_v35 = vpop.xlane.xlu0 %1026 }
 0x33a   : > { %v1061_v36 = vsub.f32 %v1788_v53, %v1027_v35  ;;  %1505 = vpow2.f32 %v1079_v33 }
 0x33b   : > { %v1837_v37 = vpop.eup %1497  ;;  %v1081_v38 = vmul.f32 1.442695, %v1060_v34 }
 0x33c   : > { %v1083_v39 = vmul.f32 1.442695, %v1061_v36  ;;  %v1030_v40 = vpop.xlane.xlu1 %1029  ;;  %v1106_v41 = vsel %vm1006_vm4, %v1837_v37, 0.0 }
 0x33d   : > { %1507 = vpow2.f32 %v1081_v38  ;;  %v1062_v42 = vsub.f32 %v1790_v54, %v1030_v40  ;;  %1107 = vadd.xlane.f32.xlu1 %v1106_v41  ;;  %v1033_v43 = vpop.xlane.xlu0 %1032 }
 0x33e   : > { %v1063_v44 = vsub.f32 %v1796_v59, %v1033_v43  ;;  %1509 = vpow2.f32 %v1083_v39 }
 0x33f   : > { %v1843_v45 = vpop.eup %1499  ;;  %v1085_v46 = vmul.f32 1.442695, %v1062_v42 }
 0x340   : > { %v1845_v47 = vpop.eup %1501  ;;  %v1087_v48 = vmul.f32 1.442695, %v1063_v44  ;;  %v1036_v49 = vpop.xlane.xlu1 %1035  ;;  %v1112_v50 = vsel %vm1006_vm4, %v1843_v45, 0.0 }
 0x341   : > { %1511 = vpow2.f32 %v1085_v46  ;;  %v1064_v51 = vsub.f32 %v1798_v60, %v1036_v49  ;;  %1113 = vadd.xlane.f32.xlu1 %v1112_v50  ;;  %v1103_v52 = vsel %vm1006_vm4, %v1845_v47, 0.0  ;;  %v1039_v53 = vpop.xlane.xlu0 %1038 }
 0x342   : > { %1104 = vadd.xlane.f32.xlu0 %v1103_v52  ;;  %v1065_v54 = vsub.f32 %v1804_v1, %v1039_v53  ;;  %1513 = vpow2.f32 %v1087_v48 }
 0x343   : > { %v1853_v55 = vpop.eup %1503  ;;  %v1089_v56 = vmul.f32 1.442695, %v1064_v51 }
 0x344   : > { %v1091_v57 = vmul.f32 1.442695, %v1065_v54  ;;  %v1042_v58 = vpop.xlane.xlu1 %1041  ;;  %v1109_v59 = vsel %vm1006_vm4, %v1853_v55, 0.0  ;;  %v1858_v62 = vpop.eup %1505 }
 0x345   : > { %1515 = vpow2.f32 %v1089_v56  ;;  %v1066_v60 = vsub.f32 %v1806_v2, %v1042_v58  ;;  %v1045_v61 = vpop.xlane.xlu0 %1044  ;;  %v1115_v2 = vsel %vm1006_vm4, %v1858_v62, 0.0 }
 0x346   : > { %1110 = vadd.xlane.f32.xlu0 %v1109_v59  ;;  %v1067_v63 = vsub.f32 %v1812_v7, %v1045_v61  ;;  %1517 = vpow2.f32 %v1091_v57 }
 0x347   : > { %v1861_v0 = vpop.eup %1507  ;;  %v1093_v1 = vmul.f32 1.442695, %v1066_v60 }
 0x348   : > { %v1095_v3 = vmul.f32 1.442695, %v1067_v63  ;;  %v1048_v4 = vpop.xlane.xlu1 %1047  ;;  %v1118_v5 = vsel %vm1006_vm4, %v1861_v0, 0.0  ;;  %v1868_v10 = vpop.eup %1509 }
 0x349   : > { %1519 = vpow2.f32 %v1093_v1  ;;  %v1068_v6 = vsub.f32 %v1814_v8, %v1048_v4  ;;  %1119 = vadd.xlane.f32.xlu1 %v1118_v5  ;;  %v1051_v9 = vpop.xlane.xlu0 %1050  ;;  %v1121_v18 = vsel %vm1006_vm4, %v1868_v10, 0.0 }
 0x34a   : > { %1116 = vadd.xlane.f32.xlu0 %v1115_v2  ;;  %v1069_v7 = vsub.f32 %v1820_v13, %v1051_v9  ;;  %1521 = vpow2.f32 %v1095_v3 }
 0x34b   : > { %v1871_v11 = vpop.eup %1511  ;;  %v1097_v12 = vmul.f32 1.442695, %v1068_v6 }
 0x34c   : > { %v1099_v15 = vmul.f32 1.442695, %v1069_v7  ;;  %v1054_v16 = vpop.xlane.xlu1 %1053  ;;  %v1124_v17 = vsel %vm1006_vm4, %v1871_v11, 0.0  ;;  %v1878_v19 = vpop.eup %1513 }
 0x34d   : > { %1523 = vpow2.f32 %v1097_v12  ;;  %v1070_v8 = vsub.f32 %v1822_v14, %v1054_v16  ;;  %1125 = vadd.xlane.f32.xlu1 %v1124_v17  ;;  %v1127_v22 = vsel %vm1006_vm4, %v1878_v19, 0.0 }
 0x34e   : > { %1122 = vadd.xlane.f32.xlu0 %v1121_v18  ;;  %1525 = vpow2.f32 %v1099_v15 }
 0x34f   : > { %v1880_v13 = vpop.eup %1515  ;;  %v1101_v20 = vmul.f32 1.442695, %v1070_v8 }
 0x350   : > { %v1130_v21 = vsel %vm1006_vm4, %v1880_v13, 0.0  ;;  %v1886_v14 = vpop.eup %1517 }
 0x351   : > { %1527 = vpow2.f32 %v1101_v20  ;;  %1131 = vadd.xlane.f32.xlu1 %v1130_v21  ;;  %v1133_v25 = vsel %vm1006_vm4, %v1886_v14, 0.0 }
 0x352   : > { %1128 = vadd.xlane.f32.xlu0 %v1127_v22 }
 0x353   : > { %v1888_v23 = vpop.eup %1519 }
 0x354   : > { %v1136_v24 = vsel %vm1006_vm4, %v1888_v23, 0.0  ;;  %v1894_v26 = vpop.eup %1521 }
 0x355   : > { %1137 = vadd.xlane.f32.xlu1 %v1136_v24  ;;  %v1139_v29 = vsel %vm1006_vm4, %v1894_v26, 0.0 }
 0x356   : > { %1134 = vadd.xlane.f32.xlu0 %v1133_v25 }
 0x357   : > { %v1896_v27 = vpop.eup %1523 }
 0x358   : > { %v1142_v28 = vsel %vm1006_vm4, %v1896_v27, 0.0  ;;  %v1902_v30 = vpop.eup %1525 }
 0x359   : > { %1143 = vadd.xlane.f32.xlu1 %v1142_v28  ;;  %v1145_v31 = vsel %vm1006_vm4, %v1902_v30, 0.0 }
 0x35a   : > { %1140 = vadd.xlane.f32.xlu0 %v1139_v29 }
 0x35b   : > { %v1904_v32 = vpop.eup %1527 }
 0x35c   : > { %v1148_v33 = vsel %vm1006_vm4, %v1904_v32, 0.0 }
 0x35d   : > { %1149 = vadd.xlane.f32.xlu1 %v1148_v33 }
 0x35e   : > { %1146 = vadd.xlane.f32.xlu0 %v1145_v31 }
 0x3ca   : > { %v1108_v34 = vpop.xlane.xlu1 %1107 }
 0x3cb   : > { %1529 = vrcp.f32 %v1108_v34 }
 0x3ce   : > { %v1114_v35 = vpop.xlane.xlu1 %1113 }
 0x3cf   : > { %1531 = vrcp.f32 %v1114_v35  ;;  %v1105_v36 = vpop.xlane.xlu0 %1104 }
 0x3d0   : > { %1533 = vrcp.f32 %v1105_v36 }
 0x3d3   : > { %v1111_v38 = vpop.xlane.xlu0 %1110 }
 0x3d4   : > { %1535 = vrcp.f32 %v1111_v38 }
 0x3d5   : > { %v1530_v39 = vpop.eup %1529 }
 0x3d6   : > { %v1168_v40 = vmul.f32 %v1530_v39, %v1837_v37  ;;  %v1120_v41 = vpop.xlane.xlu1 %1119 }
 0x3d7   : > { %1537 = vrcp.f32 %v1120_v41  ;;  %v1117_v42 = vpop.xlane.xlu0 %1116 }
 0x3d8   : > { %1184 = vst.msk [vmem:[%s1915_s16 + $0x8] sm:$0xff] %vm1006_vm4, %v1168_v40  ;;  %1539 = vrcp.f32 %v1117_v42 }
 0x3d9   : > { %v1532_v43 = vpop.eup %1531 }
 0x3da   : > { %v1534_v44 = vpop.eup %1533  ;;  %v1170_v46 = vmul.f32 %v1532_v43, %v1843_v45  ;;  %v1126_v48 = vpop.xlane.xlu1 %1125 }
 0x3db   : > { %v1167_v49 = vmul.f32 %v1534_v44, %v1845_v47  ;;  %1541 = vrcp.f32 %v1126_v48  ;;  %v1123_v50 = vpop.xlane.xlu0 %1122 }
 0x3dc   : > { %1186 = vst.msk [vmem:[%s1915_s16 + $0x18] sm:$0xff] %vm1006_vm4, %v1170_v46  ;;  %1543 = vrcp.f32 %v1123_v50 }
 0x3dd   : > { %1183 = vst.msk [vmem:[%s1915_s16] sm:$0xff] %vm1006_vm4, %v1167_v49 }
 0x3de   : > { %v1536_v37 = vpop.eup %1535  ;;  %v1132_v51 = vpop.xlane.xlu1 %1131 }
 0x3df   : > { %v1169_v52 = vmul.f32 %v1536_v37, %v1853_v55  ;;  %1545 = vrcp.f32 %v1132_v51  ;;  %v1129_v53 = vpop.xlane.xlu0 %1128 }
 0x3e0   : > { %1547 = vrcp.f32 %v1129_v53 }
 0x3e1   : > { %v1538_v45 = vpop.eup %1537  ;;  %1185 = vst.msk [vmem:[%s1915_s16 + $0x10] sm:$0xff] %vm1006_vm4, %v1169_v52 }
 0x3e2   : > { %v1540_v47 = vpop.eup %1539  ;;  %v1172_v54 = vmul.f32 %v1538_v45, %v1861_v0  ;;  %v1138_v56 = vpop.xlane.xlu1 %1137 }
 0x3e3   : > { %v1171_v57 = vmul.f32 %v1540_v47, %v1858_v62  ;;  %1549 = vrcp.f32 %v1138_v56  ;;  %v1135_v58 = vpop.xlane.xlu0 %1134 }
 0x3e4   : > { %1188 = vst.msk [vmem:[%s1915_s16 + $0x28] sm:$0xff] %vm1006_vm4, %v1172_v54  ;;  %1551 = vrcp.f32 %v1135_v58 }
 0x3e5   : > { %v1542_v55 = vpop.eup %1541  ;;  %1187 = vst.msk [vmem:[%s1915_s16 + $0x20] sm:$0xff] %vm1006_vm4, %v1171_v57 }
 0x3e6   : > { %v1544_v59 = vpop.eup %1543  ;;  %v1174_v60 = vmul.f32 %v1542_v55, %v1871_v11  ;;  %v1144_v61 = vpop.xlane.xlu1 %1143 }
 0x3e7   : > { %v1173_v63 = vmul.f32 %v1544_v59, %v1868_v10  ;;  %1553 = vrcp.f32 %v1144_v61  ;;  %v1141_v0 = vpop.xlane.xlu0 %1140 }
 0x3e8   : > { %1190 = vst.msk [vmem:[%s1915_s16 + $0x38] sm:$0xff] %vm1006_vm4, %v1174_v60  ;;  %1555 = vrcp.f32 %v1141_v0 }
 0x3e9   : > { %v1546_v62 = vpop.eup %1545  ;;  %1189 = vst.msk [vmem:[%s1915_s16 + $0x30] sm:$0xff] %vm1006_vm4, %v1173_v63 }
 0x3ea   : > { %v1548_v1 = vpop.eup %1547  ;;  %v1176_v3 = vmul.f32 %v1546_v62, %v1880_v13  ;;  %v1150_v4 = vpop.xlane.xlu1 %1149 }
 0x3eb   : > { %v1175_v5 = vmul.f32 %v1548_v1, %v1878_v19  ;;  %1557 = vrcp.f32 %v1150_v4  ;;  %v1147_v6 = vpop.xlane.xlu0 %1146 }
 0x3ec   : > { %1192 = vst.msk [vmem:[%s1915_s16 + $0x48] sm:$0xff] %vm1006_vm4, %v1176_v3  ;;  %1559 = vrcp.f32 %v1147_v6 }
 0x3ed   : > { %v1550_v2 = vpop.eup %1549  ;;  %1191 = vst.msk [vmem:[%s1915_s16 + $0x40] sm:$0xff] %vm1006_vm4, %v1175_v5 }
 0x3ee   : > { %v1552_v9 = vpop.eup %1551  ;;  %v1178_v10 = vmul.f32 %v1550_v2, %v1888_v23 }
 0x3ef   : > { %v1177_v7 = vmul.f32 %v1552_v9, %v1886_v14 }
 0x3f0   : > { %1194 = vst.msk [vmem:[%s1915_s16 + $0x58] sm:$0xff] %vm1006_vm4, %v1178_v10 }
 0x3f1   : > { %v1554_v11 = vpop.eup %1553  ;;  %1193 = vst.msk [vmem:[%s1915_s16 + $0x50] sm:$0xff] %vm1006_vm4, %v1177_v7 }
 0x3f2   : > { %v1556_v12 = vpop.eup %1555  ;;  %v1180_v15 = vmul.f32 %v1554_v11, %v1896_v27 }
 0x3f3   : > { %v1179_v16 = vmul.f32 %v1556_v12, %v1894_v26 }
 0x3f4   : > { %1196 = vst.msk [vmem:[%s1915_s16 + $0x68] sm:$0xff] %vm1006_vm4, %v1180_v15 }
 0x3f5   : > { %v1558_v17 = vpop.eup %1557  ;;  %1195 = vst.msk [vmem:[%s1915_s16 + $0x60] sm:$0xff] %vm1006_vm4, %v1179_v16 }
 0x3f6   : > { %v1560_v8 = vpop.eup %1559  ;;  %v1182_v18 = vmul.f32 %v1558_v17, %v1904_v32 }
 0x3f7   : > { %v1181_v19 = vmul.f32 %v1560_v8, %v1902_v30 }
 0x3f8   : > { %1198 = vst.msk [vmem:[%s1915_s16 + $0x78] sm:$0xff] %vm1006_vm4, %v1182_v18 }
 0x3f9   : > { %1197 = vst.msk [vmem:[%s1915_s16 + $0x70] sm:$0xff] %vm1006_vm4, %v1181_v19 }
 0x3fa PF: > { %s17_s24 = sadd.s32 1, %s1567_s24  }
 0x3fb   : > { %p14_p4 = scmp.ge.s32.totalorder %s17_s24, 4  }
 0x3fd   :  { %16 = sbr.rel (!%p14_p4) target bundleno = 1 (0x1), region = 78 }

</bundles_post_ra>
